<compile_context>
chip_gen: v5e
topology: v5e:2x2
jax: 0.10.0
libtpu: 0.0.40
codegen_flags: <defaults>
</compile_context>

<pallas_src>
import jax
import jax.numpy as jnp
from jax.experimental import pallas as pl
from jax.experimental.pallas import tpu as pltpu


LN_EPS = 1e-5  # PyTorch nn.LayerNorm default


def _leaky_relu(h, slope=0.1):
    return jnp.where(h > 0, h, slope * h)


def value_network_kernel(x_ref, w1t_ref, b1_ref, w2t_ref, b2_ref,
                         w3_ref, scal_ref, o_ref):
    hidden = w1t_ref.shape[0]
    inv_h = 1.0 / hidden

    # fc1: (hidden, in_dim) @ (in_dim, tile_b) on MXU, f32 accumulate.
    h = jnp.dot(w1t_ref[...], x_ref[...], preferred_element_type=jnp.float32)
    h = _leaky_relu(h + b1_ref[...])

    # LayerNorm 1 (normalize only; affine folded into fc2 offline).
    # sum / sum-of-squares form -> the two sublane reductions are independent.
    s1 = jnp.sum(h, axis=0, keepdims=True)              # (1, tile_b)
    s2 = jnp.sum(h * h, axis=0, keepdims=True)           # (1, tile_b)
    mean1 = s1 * inv_h
    var1 = s2 * inv_h - mean1 * mean1
    inv_std1 = jax.lax.rsqrt(var1 + LN_EPS)
    n1 = ((h - mean1) * inv_std1).astype(jnp.bfloat16)

    # fc2: (hidden, hidden) @ (hidden, tile_b) on MXU, f32 accumulate.
    h = jnp.dot(w2t_ref[...], n1, preferred_element_type=jnp.float32)
    h = _leaky_relu(h + b2_ref[...])

    # LayerNorm 2 fused algebraically into fc3:
    #   v = rsqrt(var2) * (sum(h * w3f) - mean2 * sum(w3f)) + b3f
    t1 = jnp.sum(h, axis=0, keepdims=True)                       # sum h
    t2 = jnp.sum(h * h, axis=0, keepdims=True)                   # sum h^2
    t3 = jnp.sum(h * w3_ref[...], axis=0, keepdims=True)         # sum h*w3f
    mean2 = t1 * inv_h
    var2 = t2 * inv_h - mean2 * mean2
    inv_std2 = jax.lax.rsqrt(var2 + LN_EPS)
    w3sum = scal_ref[0]
    b3 = scal_ref[1]
    v = inv_std2 * (t3 - mean2 * w3sum) + b3                     # (1, tile_b)
    o_ref[...] = v.astype(o_ref.dtype)                           # lane-dense store


def _round_up(n, m):
    return (n + m - 1) // m * m


def _cdiv(a, b):
    return -(-a // b)


def _choose_tiling(batch, cap=4096):
    """tile_b multiple of 128, >=2 grid steps when batch >= 256, bounded padding."""
    b128 = _round_up(batch, 128)
    if b128 <= 128:
        return b128, b128                       # single small tile
    steps = max(2, _cdiv(b128, cap))            # >=2 so v7x's 2 TCs both work
    tile_b = _round_up(_cdiv(b128, steps), 128)
    return tile_b, tile_b * steps               # padding waste <= ~128 * steps


def prepare_params(p):
    """One-time wrapper-side prep: fold LN affines forward, transpose weights
    for the feature-major kernel layout, cast matmul operands to bf16."""
    g1 = p["g1"].reshape(-1)
    be1 = p["be1"].reshape(1, -1)
    g2 = p["g2"].reshape(-1)
    be2 = p["be2"].reshape(1, -1)
    hidden = p["w1"].shape[1]

    w2f = p["w2"] * g1[:, None]                              # diag(g1) @ w2
    b2f = p["b2"].reshape(-1) + (be1 @ p["w2"]).reshape(-1)  # b2 + be1 @ w2
    w3f = (p["w3"] * g2[:, None]).reshape(-1)                # diag(g2) @ w3
    b3f = p["b3"].reshape(()) + (be2 @ p["w3"]).reshape(())  # b3 + be2 @ w3

    return {
        "w1t": p["w1"].T.astype(jnp.bfloat16),                    # (hidden, in_dim)
        "b1": p["b1"].reshape(hidden, 1).astype(jnp.float32),     # column bias
        "w2t": w2f.T.astype(jnp.bfloat16),                        # (hidden, hidden)
        "b2": b2f.reshape(hidden, 1).astype(jnp.float32),
        "w3": w3f.reshape(hidden, 1).astype(jnp.float32),         # column for VPU mul
        "scal": jnp.stack([w3f.sum(), b3f]).astype(jnp.float32),  # [sum(w3f), b3f] -> SMEM
    }


def value_network_forward(x, fused, *, tile_cap=4096):
    B, in_dim = x.shape
    hidden = fused["w1t"].shape[0]

    tile_b, b_pad = _choose_tiling(B, tile_cap)

    # Feature-major input tile: (in_dim, B_pad), batch along lanes.
    xt = x.astype(jnp.bfloat16).T
    if b_pad != B:
        xt = jnp.pad(xt, ((0, 0), (0, b_pad - B)))

    grid = (b_pad // tile_b,)

    out = pl.pallas_call(
        value_network_kernel,
        out_shape=jax.ShapeDtypeStruct((1, b_pad), jnp.float32),
        grid=grid,
        in_specs=[
            pl.BlockSpec((in_dim, tile_b), lambda i: (0, i)),    # x^T tile (pipelined)
            pl.BlockSpec((hidden, in_dim), lambda i: (0, 0)),    # w1^T (resident)
            pl.BlockSpec((hidden, 1), lambda i: (0, 0)),         # b1 column
            pl.BlockSpec((hidden, hidden), lambda i: (0, 0)),    # w2^T (resident)
            pl.BlockSpec((hidden, 1), lambda i: (0, 0)),         # b2 column
            pl.BlockSpec((hidden, 1), lambda i: (0, 0)),         # w3 column
            pl.BlockSpec(memory_space=pltpu.SMEM),               # [sum(w3f), b3f]
        ],
        out_specs=pl.BlockSpec((1, tile_b), lambda i: (0, i)),   # lane-dense output
        compiler_params=pltpu.CompilerParams(
            dimension_semantics=("parallel",),
            vmem_limit_bytes=32 * 1024 * 1024,
        ),
    )(xt, fused["w1t"], fused["b1"], fused["w2t"], fused["b2"],
      fused["w3"], fused["scal"])

    return out[0, :B].reshape(B, 1)


def init_params(key, input_dim, hidden_dim=128):
    k1, k2, k3, k4 = jax.random.split(key, 4)

    def lin(k, fan_in, fan_out):
        bound = 1.0 / jnp.sqrt(fan_in)
        kw, kb = jax.random.split(k)
        w = jax.random.uniform(kw, (fan_in, fan_out), jnp.float32, -bound, bound)
        b = jax.random.uniform(kb, (fan_out,), jnp.float32, -bound, bound)
        return w, b

    w1, b1 = lin(k1, input_dim, hidden_dim)
    w2, b2 = lin(k2, hidden_dim, hidden_dim)
    w3, b3 = lin(k3, hidden_dim, 1)

    # Non-trivial LN affine params so the offline folding path is exercised.
    kg1, kb1_, kg2, kb2_ = jax.random.split(k4, 4)
    g1 = 1.0 + 0.1 * jax.random.normal(kg1, (hidden_dim,), jnp.float32)
    be1 = 0.05 * jax.random.normal(kb1_, (hidden_dim,), jnp.float32)
    g2 = 1.0 + 0.1 * jax.random.normal(kg2, (hidden_dim,), jnp.float32)
    be2 = 0.05 * jax.random.normal(kb2_, (hidden_dim,), jnp.float32)

    return {"w1": w1, "b1": b1, "g1": g1, "be1": be1,
            "w2": w2, "b2": b2, "g2": g2, "be2": be2,
            "w3": w3, "b3": b3}


def reference_forward(x, p):
    # Pure-JAX f32 reference with the ORIGINAL (unfolded) parameters.
    def ln(h, g, b):
        m = h.mean(-1, keepdims=True)
        v = ((h - m) ** 2).mean(-1, keepdims=True)
        return (h - m) * jax.lax.rsqrt(v + LN_EPS) * g + b

    h = x @ p["w1"] + p["b1"]
    h = jnp.where(h > 0, h, 0.1 * h)
    h = ln(h, p["g1"], p["be1"])
    h = h @ p["w2"] + p["b2"]
    h = jnp.where(h > 0, h, 0.1 * h)
    h = ln(h, p["g2"], p["be2"])
    return h @ p["w3"] + p["b3"]


if __name__ == "__main__":
    key = jax.random.PRNGKey(0)
    kx, kx2, kp = jax.random.split(key, 3)

    batch, input_dim, hidden_dim = 12, 32, 128
    x = jax.random.normal(kx, (batch, input_dim), jnp.float32)
    params = init_params(kp, input_dim, hidden_dim)
    fused = prepare_params(params)  # one-time fold + transpose + bf16 cast

    # Small batch (tests the single-tile / pad-to-128 path).
    out = jax.block_until_ready(value_network_forward(x, fused))
    ref = reference_forward(x, params)
    assert out.shape == (batch, 1)
    assert jnp.allclose(out, ref, atol=5e-2, rtol=5e-2)

    # Larger, non-aligned batch (tests the multi-step grid + bounded padding).
    batch2 = 300
    x2 = jax.random.normal(kx2, (batch2, input_dim), jnp.float32)
    out2 = jax.block_until_ready(value_network_forward(x2, fused))
    ref2 = reference_forward(x2, params)
    assert out2.shape == (batch2, 1)
    assert jnp.allclose(out2, ref2, atol=5e-2, rtol=5e-2)

    print("KERNEL_OK")
</pallas_src>

<mosaic_0001>
module attributes {stable_mosaic.version = 11 : i64} {
  func.func @value_network_kernel(%arg0: i32, %arg1: memref<32x128xbf16, #tpu.memory_space<vmem>>, %arg2: memref<128x32xbf16, #tpu.memory_space<vmem>>, %arg3: memref<128x1xf32, #tpu.memory_space<vmem>>, %arg4: memref<128x128xbf16, #tpu.memory_space<vmem>>, %arg5: memref<128x1xf32, #tpu.memory_space<vmem>>, %arg6: memref<128x1xf32, #tpu.memory_space<vmem>>, %arg7: memref<2xf32, #tpu.memory_space<smem>>, %arg8: memref<1x128xf32, #tpu.memory_space<vmem>>) attributes {dimension_semantics = [#tpu.dimension_semantics<parallel>], iteration_bounds = array<i64: 1>, scalar_prefetch = 0 : i64, scratch_operands = 0 : i64, tpu.core_type = #tpu.core_type<tc>, window_params = [{transform_indices = @transform_0, window_bounds = array<i64: 32, 128>}, {pipeline_mode = #tpu.pipeline_mode<synchronous>, transform_indices = @transform_1, window_bounds = array<i64: 128, 32>}, {pipeline_mode = #tpu.pipeline_mode<synchronous>, transform_indices = @transform_2, window_bounds = array<i64: 128, 1>}, {pipeline_mode = #tpu.pipeline_mode<synchronous>, transform_indices = @transform_3, window_bounds = array<i64: 128, 128>}, {pipeline_mode = #tpu.pipeline_mode<synchronous>, transform_indices = @transform_4, window_bounds = array<i64: 128, 1>}, {pipeline_mode = #tpu.pipeline_mode<synchronous>, transform_indices = @transform_5, window_bounds = array<i64: 128, 1>}, {transform_indices = @transform_6, window_bounds = array<i64: 2>}, {transform_indices = @transform_7, window_bounds = array<i64: 1, 128>}]} {
    %c0 = arith.constant 0 : index
    %c0_0 = arith.constant 0 : index
    %0 = vector.load %arg2[%c0, %c0_0] : memref<128x32xbf16, #tpu.memory_space<vmem>>, vector<128x32xbf16>
    %c0_1 = arith.constant 0 : index
    %c0_2 = arith.constant 0 : index
    %1 = vector.load %arg1[%c0_1, %c0_2] : memref<32x128xbf16, #tpu.memory_space<vmem>>, vector<32x128xbf16>
    %cst = arith.constant dense<0.000000e+00> : vector<128x128xf32>
    %2 = tpu.matmul %0, %1, %cst {dimension_numbers = #tpu.dot_dimension_numbers<[1], [0], [0], [1], [0, 0, 1, 1], [], []>} : vector<128x32xbf16>, vector<32x128xbf16>, vector<128x128xf32> -> vector<128x128xf32>
    %c0_3 = arith.constant 0 : index
    %c0_4 = arith.constant 0 : index
    %3 = vector.load %arg3[%c0_3, %c0_4] : memref<128x1xf32, #tpu.memory_space<vmem>>, vector<128x1xf32>
    %4 = vector.broadcast %3 : vector<128x1xf32> to vector<128x128xf32>
    %5 = arith.addf %2, %4 : vector<128x128xf32>
    %cst_5 = arith.constant 0.000000e+00 : f32
    %6 = vector.broadcast %cst_5 : f32 to vector<128x128xf32>
    %7 = arith.cmpf ogt, %5, %6 : vector<128x128xf32>
    %cst_6 = arith.constant 1.000000e-01 : f32
    %8 = vector.broadcast %cst_6 : f32 to vector<128x128xf32>
    %9 = arith.mulf %8, %5 : vector<128x128xf32>
    %10 = arith.select %7, %5, %9 : vector<128x128xi1>, vector<128x128xf32>
    %cst_7 = arith.constant dense<0.000000e+00> : vector<128xf32>
    %11 = vector.multi_reduction <add>, %10, %cst_7 [0] : vector<128x128xf32> to vector<128xf32>
    %12 = vector.shape_cast %11 : vector<128xf32> to vector<1x128xf32>
    %13 = arith.mulf %10, %10 : vector<128x128xf32>
    %cst_8 = arith.constant dense<0.000000e+00> : vector<128xf32>
    %14 = vector.multi_reduction <add>, %13, %cst_8 [0] : vector<128x128xf32> to vector<128xf32>
    %15 = vector.shape_cast %14 : vector<128xf32> to vector<1x128xf32>
    %cst_9 = arith.constant 7.812500e-03 : f32
    %16 = vector.broadcast %cst_9 : f32 to vector<1x128xf32>
    %17 = arith.mulf %12, %16 : vector<1x128xf32>
    %cst_10 = arith.constant 7.812500e-03 : f32
    %18 = vector.broadcast %cst_10 : f32 to vector<1x128xf32>
    %19 = arith.mulf %15, %18 : vector<1x128xf32>
    %20 = arith.mulf %17, %17 : vector<1x128xf32>
    %21 = arith.subf %19, %20 : vector<1x128xf32>
    %cst_11 = arith.constant 9.99999974E-6 : f32
    %22 = vector.broadcast %cst_11 : f32 to vector<1x128xf32>
    %23 = arith.addf %21, %22 : vector<1x128xf32>
    %24 = math.rsqrt %23 : vector<1x128xf32>
    %25 = vector.broadcast %17 : vector<1x128xf32> to vector<128x128xf32>
    %26 = arith.subf %10, %25 : vector<128x128xf32>
    %27 = vector.broadcast %24 : vector<1x128xf32> to vector<128x128xf32>
    %28 = arith.mulf %26, %27 : vector<128x128xf32>
    %29 = arith.truncf %28 : vector<128x128xf32> to vector<128x128xbf16>
    %c0_12 = arith.constant 0 : index
    %c0_13 = arith.constant 0 : index
    %30 = vector.load %arg4[%c0_12, %c0_13] : memref<128x128xbf16, #tpu.memory_space<vmem>>, vector<128x128xbf16>
    %cst_14 = arith.constant dense<0.000000e+00> : vector<128x128xf32>
    %31 = tpu.matmul %30, %29, %cst_14 {dimension_numbers = #tpu.dot_dimension_numbers<[1], [0], [0], [1], [0, 0, 1, 1], [], []>} : vector<128x128xbf16>, vector<128x128xbf16>, vector<128x128xf32> -> vector<128x128xf32>
    %c0_15 = arith.constant 0 : index
    %c0_16 = arith.constant 0 : index
    %32 = vector.load %arg5[%c0_15, %c0_16] : memref<128x1xf32, #tpu.memory_space<vmem>>, vector<128x1xf32>
    %33 = vector.broadcast %32 : vector<128x1xf32> to vector<128x128xf32>
    %34 = arith.addf %31, %33 : vector<128x128xf32>
    %cst_17 = arith.constant 0.000000e+00 : f32
    %35 = vector.broadcast %cst_17 : f32 to vector<128x128xf32>
    %36 = arith.cmpf ogt, %34, %35 : vector<128x128xf32>
    %cst_18 = arith.constant 1.000000e-01 : f32
    %37 = vector.broadcast %cst_18 : f32 to vector<128x128xf32>
    %38 = arith.mulf %37, %34 : vector<128x128xf32>
    %39 = arith.select %36, %34, %38 : vector<128x128xi1>, vector<128x128xf32>
    %cst_19 = arith.constant dense<0.000000e+00> : vector<128xf32>
    %40 = vector.multi_reduction <add>, %39, %cst_19 [0] : vector<128x128xf32> to vector<128xf32>
    %41 = vector.shape_cast %40 : vector<128xf32> to vector<1x128xf32>
    %42 = arith.mulf %39, %39 : vector<128x128xf32>
    %cst_20 = arith.constant dense<0.000000e+00> : vector<128xf32>
    %43 = vector.multi_reduction <add>, %42, %cst_20 [0] : vector<128x128xf32> to vector<128xf32>
    %44 = vector.shape_cast %43 : vector<128xf32> to vector<1x128xf32>
    %c0_21 = arith.constant 0 : index
    %c0_22 = arith.constant 0 : index
    %45 = vector.load %arg6[%c0_21, %c0_22] : memref<128x1xf32, #tpu.memory_space<vmem>>, vector<128x1xf32>
    %46 = vector.broadcast %45 : vector<128x1xf32> to vector<128x128xf32>
    %47 = arith.mulf %39, %46 : vector<128x128xf32>
    %cst_23 = arith.constant dense<0.000000e+00> : vector<128xf32>
    %48 = vector.multi_reduction <add>, %47, %cst_23 [0] : vector<128x128xf32> to vector<128xf32>
    %49 = vector.shape_cast %48 : vector<128xf32> to vector<1x128xf32>
    %cst_24 = arith.constant 7.812500e-03 : f32
    %50 = vector.broadcast %cst_24 : f32 to vector<1x128xf32>
    %51 = arith.mulf %41, %50 : vector<1x128xf32>
    %cst_25 = arith.constant 7.812500e-03 : f32
    %52 = vector.broadcast %cst_25 : f32 to vector<1x128xf32>
    %53 = arith.mulf %44, %52 : vector<1x128xf32>
    %54 = arith.mulf %51, %51 : vector<1x128xf32>
    %55 = arith.subf %53, %54 : vector<1x128xf32>
    %cst_26 = arith.constant 9.99999974E-6 : f32
    %56 = vector.broadcast %cst_26 : f32 to vector<1x128xf32>
    %57 = arith.addf %55, %56 : vector<1x128xf32>
    %58 = math.rsqrt %57 : vector<1x128xf32>
    %c0_27 = arith.constant 0 : index
    %59 = memref.load %arg7[%c0_27] : memref<2xf32, #tpu.memory_space<smem>>
    %c1 = arith.constant 1 : index
    %60 = memref.load %arg7[%c1] : memref<2xf32, #tpu.memory_space<smem>>
    %61 = vector.broadcast %59 : f32 to vector<1x128xf32>
    %62 = arith.mulf %51, %61 : vector<1x128xf32>
    %63 = arith.subf %49, %62 : vector<1x128xf32>
    %64 = arith.mulf %58, %63 : vector<1x128xf32>
    %65 = vector.broadcast %60 : f32 to vector<1x128xf32>
    %66 = arith.addf %64, %65 : vector<1x128xf32>
    %c0_28 = arith.constant 0 : index
    %c0_29 = arith.constant 0 : index
    %67 = vector.load %arg8[%c0_28, %c0_29] : memref<1x128xf32, #tpu.memory_space<vmem>>, vector<1x128xf32>
    tpu.vector_store %arg8[%c0_28, %c0_29], %66 {strides = array<i32>} : memref<1x128xf32, #tpu.memory_space<vmem>>, vector<1x128xf32>,
    return
  }
  func.func @transform_0(%arg0: i32) -> (i32, i32) {
    %c0_i32 = arith.constant 0 : i32
    %c0_i32_0 = arith.constant 0 : i32
    return %c0_i32, %arg0 : i32, i32
  }
  func.func @transform_1(%arg0: i32) -> (i32, i32) {
    %c0_i32 = arith.constant 0 : i32
    %c0_i32_0 = arith.constant 0 : i32
    %c0_i32_1 = arith.constant 0 : i32
    return %c0_i32, %c0_i32_0 : i32, i32
  }
  func.func @transform_2(%arg0: i32) -> (i32, i32) {
    %c0_i32 = arith.constant 0 : i32
    %c0_i32_0 = arith.constant 0 : i32
    %c0_i32_1 = arith.constant 0 : i32
    return %c0_i32, %c0_i32_0 : i32, i32
  }
  func.func @transform_3(%arg0: i32) -> (i32, i32) {
    %c0_i32 = arith.constant 0 : i32
    %c0_i32_0 = arith.constant 0 : i32
    %c0_i32_1 = arith.constant 0 : i32
    return %c0_i32, %c0_i32_0 : i32, i32
  }
  func.func @transform_4(%arg0: i32) -> (i32, i32) {
    %c0_i32 = arith.constant 0 : i32
    %c0_i32_0 = arith.constant 0 : i32
    %c0_i32_1 = arith.constant 0 : i32
    return %c0_i32, %c0_i32_0 : i32, i32
  }
  func.func @transform_5(%arg0: i32) -> (i32, i32) {
    %c0_i32 = arith.constant 0 : i32
    %c0_i32_0 = arith.constant 0 : i32
    %c0_i32_1 = arith.constant 0 : i32
    return %c0_i32, %c0_i32_0 : i32, i32
  }
  func.func @transform_6(%arg0: i32) -> i32 {
    %c0_i32 = arith.constant 0 : i32
    %c0_i32_0 = arith.constant 0 : i32
    return %c0_i32 : i32
  }
  func.func @transform_7(%arg0: i32) -> (i32, i32) {
    %c0_i32 = arith.constant 0 : i32
    %c0_i32_0 = arith.constant 0 : i32
    return %c0_i32, %arg0 : i32, i32
  }
}

</mosaic_0001>

<bundles_post_ra>
// kernel: tpu_custom_call.1
= control target key start
LH: loop header
LB: loop body
LE: loop exit
PB: predicated region body
PF: predicated region fallthrough
CT: control target
= control target key end

     0   :  { %12 = vsyncpa [#allocation4], 0  ;;  %s1487_s0 = inlined_call_operand.vmem [shape: bf16[32,128], index: 0, kind: input, shape index: {}]   ;;  %s1488_s1 = inlined_call_operand.vmem [shape: bf16[128,32], index: 1, kind: input, shape index: {}]   ;;  %s1489_s2 = inlined_call_operand.vmem [shape: f32[128,1], index: 2, kind: input, shape index: {}]   ;;  %s1490_s3 = inlined_call_operand.vmem [shape: bf16[128,128], index: 3, kind: input, shape index: {}]   ;;  %s1491_s4 = inlined_call_operand.vmem [shape: f32[128,1], index: 4, kind: input, shape index: {}]   ;;  %s1492_s5 = inlined_call_operand.vmem [shape: f32[128,1], index: 5, kind: input, shape index: {}]   ;;  %s1493_s6 = inlined_call_operand.vmem [shape: f32[2], index: 6, kind: input, shape index: {}]   ;;  %s1494_s7 = inlined_call_operand.hbm [shape: f32[1,128], index: 7, kind: output, shape index: {}]  }
   0x1   :  { %13 = vsyncpa [#allocation3], 0  ;;  %s31_s26 = sshll.u32 %s1493_s6, 4  ;;  %s1092_s27 = smov [#allocation2]   ;;  %s32_s26 = int_to_ptr.vmem [resolvable:$true] %s31_s26 }
   0x2   :  { %34 = dma.vmem_to_smem %s32_s26, 16, %s1092_s27, [#allocation4]  }
   0x3   :  { %1088 = dma.done.wait [#allocation4], 16  }
   0x4   :  { %1089 = vsyncadd [#allocation4], 4294967280 }
   0x5   :  { %39 = sfence }
   0x6   :  { %v65_v0 = vld [vmem:[%s1489_s2 + $0x20] sm:$0xff]  ;;  %v63_v1 = vld [vmem:[%s1489_s2 + $0x10] sm:$0xff]  ;;  %v1093_v3 = vmov 0   ;;  %v1023_v4 = vld [vmem:[%s1487_s0 + $0x8] sm:$0xff]  ;;  %vm209_vm0 = vcmask 261120   ;;  %s1013_s27 = sld [smem:[#allocation2 + $0x1]] }
   0x7   :  { %v61_v2 = vld [vmem:[%s1489_s2] sm:$0xff]  ;;  %1047 = vset.pattern.permute.xlu2 %v1093_v3  ;;  %1046 = vset.pattern.permute.xlu1 %v1093_v3  ;;  %v66_v6 = vld [vmem:[%s1489_s2 + $0x28] sm:$0xff]  ;;  %v64_v7 = vld [vmem:[%s1489_s2 + $0x18] sm:$0xff]  ;;  %s1094_s28 = smov [#allocation5]  }
   0x8   :  { %1045 = vset.pattern.permute.xlu0 %v1093_v3  ;;  %99 = vperm.xlu2 %1047, %v65_v0   ;;  %v1022_v5 = vld [vmem:[%s1487_s0] sm:$0xff]  ;;  %v62_v8 = vld [vmem:[%s1489_s2 + $0x8] sm:$0xff]  ;;  %v68_v12 = vld [vmem:[%s1489_s2 + $0x38] sm:$0xff]  ;;  %s921_s29 = sshll.u32 %s1094_s28, 4  ;;  %s922_s29 = int_to_ptr.vmem [resolvable:$true] %s921_s29 }
   0x9   :  { %89 = vperm.xlu1 %1046, %v63_v1   ;;  %79 = vperm.xlu0 %1045, %v61_v2   ;;  %v1014_v9 = vld [vmem:[%s1488_s1] sm:$0xff]  ;;  %v1019_v10 = vld [vmem:[%s1488_s1 + $0x28] sm:$0xff]  ;;  %v67_v13 = vld [vmem:[%s1489_s2 + $0x30] sm:$0xff] }
   0xa   :  { %240 = vmatpush.bf16.msra.mxu0 %v1023_v4  ;;  %1032 = vmatpush.bf16.msra.mxu3 %v1023_v4  ;;  %v69_v11 = vld [vmem:[%s1489_s2 + $0x40] sm:$0xff]  ;;  %v72_v14 = vld [vmem:[%s1489_s2 + $0x58] sm:$0xff]  ;;  %v71_v15 = vld [vmem:[%s1489_s2 + $0x50] sm:$0xff] }
   0xb   :  { %v70_v16 = vld [vmem:[%s1489_s2 + $0x48] sm:$0xff]  ;;  %v1020_v18 = vld [vmem:[%s1488_s1 + $0x30] sm:$0xff]  ;;  %v73_v21 = vld [vmem:[%s1489_s2 + $0x60] sm:$0xff] }
   0xc   :  { %v1015_v17 = vld [vmem:[%s1488_s1 + $0x8] sm:$0xff]  ;;  %v75_v19 = vld [vmem:[%s1489_s2 + $0x70] sm:$0xff]  ;;  %v460_v23 = vld [vmem:[%s1491_s4] sm:$0xff] }
   0xd   :  { %v74_v20 = vld [vmem:[%s1489_s2 + $0x68] sm:$0xff]  ;;  %v76_v24 = vld [vmem:[%s1489_s2 + $0x78] sm:$0xff]  ;;  %v1016_v25 = vld [vmem:[%s1488_s1 + $0x10] sm:$0xff]  ;;  %s923_s2 = sshll.u32 %s1494_s7, 4  ;;  %s924_s2 = int_to_ptr.hbm [resolvable:$true] %s923_s2 }
   0xe   :  { %241 = vmatpush.bf16.msra.mxu0 %v1022_v5  ;;  %1033 = vmatpush.bf16.msra.mxu3 %v1022_v5  ;;  %v461_v22 = vld [vmem:[%s1491_s4 + $0x8] sm:$0xff]  ;;  %v1021_v26 = vld [vmem:[%s1488_s1 + $0x38] sm:$0xff]  ;;  %v464_v27 = vld [vmem:[%s1491_s4 + $0x20] sm:$0xff] }
   0xf   :  { %v463_v28 = vld [vmem:[%s1491_s4 + $0x18] sm:$0xff]  ;;  %v462_v29 = vld [vmem:[%s1491_s4 + $0x10] sm:$0xff]  ;;  %v465_v32 = vld [vmem:[%s1491_s4 + $0x28] sm:$0xff] }
  0x10   :  { %104 = vperm.xlu2 %1047, %v66_v6   ;;  %v467_v30 = vld [vmem:[%s1491_s4 + $0x38] sm:$0xff]  ;;  %v466_v31 = vld [vmem:[%s1491_s4 + $0x30] sm:$0xff]  ;;  %v469_v35 = vld [vmem:[%s1491_s4 + $0x48] sm:$0xff] }
  0x11   :  { %94 = vperm.xlu1 %1046, %v64_v7   ;;  %84 = vperm.xlu0 %1045, %v62_v8   ;;  %v1017_v33 = vld [vmem:[%s1488_s1 + $0x18] sm:$0xff]  ;;  %v470_v34 = vld [vmem:[%s1491_s4 + $0x50] sm:$0xff]  ;;  %v468_v36 = vld [vmem:[%s1491_s4 + $0x40] sm:$0xff] }
  0x12   :  { %973 = vmatmul.msk.bf16.vlgmr.msra.gmra.mxu0 %vm209_vm0, %v1014_v9  ;;  %978 = vmatmul.msk.bf16.vlgmr.msra.gmra.mxu3 %vm209_vm0, %v1019_v10  ;;  %v473_v37 = vld [vmem:[%s1491_s4 + $0x68] sm:$0xff]  ;;  %v472_v38 = vld [vmem:[%s1491_s4 + $0x60] sm:$0xff]  ;;  %v471_v39 = vld [vmem:[%s1491_s4 + $0x58] sm:$0xff] }
  0x13   :  { %v1018_v40 = vld [vmem:[%s1488_s1 + $0x20] sm:$0xff]  ;;  %v475_v42 = vld [vmem:[%s1491_s4 + $0x78] sm:$0xff]  ;;  %v474_v43 = vld [vmem:[%s1491_s4 + $0x70] sm:$0xff] }
  0x14   :  { %v759_v41 = vld [vmem:[%s1492_s5] sm:$0xff]  ;;  %v762_v44 = vld [vmem:[%s1492_s5 + $0x18] sm:$0xff]  ;;  %v761_v45 = vld [vmem:[%s1492_s5 + $0x10] sm:$0xff] }
  0x15   :  { %v760_v46 = vld [vmem:[%s1492_s5 + $0x8] sm:$0xff]  ;;  %v765_v47 = vld [vmem:[%s1492_s5 + $0x30] sm:$0xff]  ;;  %v763_v49 = vld [vmem:[%s1492_s5 + $0x20] sm:$0xff] }
  0x16   :  { %v764_v48 = vld [vmem:[%s1492_s5 + $0x28] sm:$0xff]  ;;  %v767_v51 = vld [vmem:[%s1492_s5 + $0x40] sm:$0xff]  ;;  %v766_v52 = vld [vmem:[%s1492_s5 + $0x38] sm:$0xff] }
  0x17   :  { %v768_v50 = vld [vmem:[%s1492_s5 + $0x48] sm:$0xff]  ;;  %v771_v53 = vld [vmem:[%s1492_s5 + $0x60] sm:$0xff]  ;;  %v770_v54 = vld [vmem:[%s1492_s5 + $0x58] sm:$0xff] }
  0x18   :  { %119 = vperm.xlu2 %1047, %v69_v11   ;;  %v769_v55 = vld [vmem:[%s1492_s5 + $0x50] sm:$0xff]  ;;  %v774_v56 = vld [vmem:[%s1492_s5 + $0x78] sm:$0xff]  ;;  %v772_v58 = vld [vmem:[%s1492_s5 + $0x68] sm:$0xff] }
  0x19   :  { %114 = vperm.xlu1 %1046, %v68_v12   ;;  %109 = vperm.xlu0 %1045, %v67_v13   ;;  %v773_v57 = vld [vmem:[%s1492_s5 + $0x70] sm:$0xff] }
  0x20   :  { %134 = vperm.xlu2 %1047, %v72_v14  }
  0x21   :  { %129 = vperm.xlu1 %1046, %v71_v15   ;;  %124 = vperm.xlu0 %1045, %v70_v16  }
  0x22   :  { %974 = vmatmul.msk.bf16.gmra.mxu0 %vm209_vm0, %v1015_v17  ;;  %979 = vmatmul.msk.bf16.gmra.mxu3 %vm209_vm0, %v1020_v18 }
  0x28   :  { %149 = vperm.xlu2 %1047, %v75_v19  }
  0x29   :  { %144 = vperm.xlu1 %1046, %v74_v20   ;;  %139 = vperm.xlu0 %1045, %v73_v21  }
  0x30   :  { %483 = vperm.xlu2 %1047, %v461_v22  }
  0x31   :  { %478 = vperm.xlu1 %1046, %v460_v23   ;;  %154 = vperm.xlu0 %1045, %v76_v24  }
  0x32   :  { %975 = vmatmul.msk.bf16.gmra.mxu0 %vm209_vm0, %v1016_v25  ;;  %980 = vmatmul.msk.bf16.gmra.mxu3 %vm209_vm0, %v1021_v26 }
  0x38   :  { %498 = vperm.xlu2 %1047, %v464_v27  }
  0x39   :  { %493 = vperm.xlu1 %1046, %v463_v28   ;;  %488 = vperm.xlu0 %1045, %v462_v29  }
  0x40   :  { %513 = vperm.xlu2 %1047, %v467_v30  }
  0x41   :  { %508 = vperm.xlu1 %1046, %v466_v31   ;;  %503 = vperm.xlu0 %1045, %v465_v32  }
  0x42   :  { %976 = vmatmul.msk.bf16.gmra.mxu0 %vm209_vm0, %v1017_v33 }
  0x48   :  { %528 = vperm.xlu2 %1047, %v470_v34  }
  0x49   :  { %523 = vperm.xlu1 %1046, %v469_v35   ;;  %518 = vperm.xlu0 %1045, %v468_v36  }
  0x50   :  { %543 = vperm.xlu2 %1047, %v473_v37  }
  0x51   :  { %538 = vperm.xlu1 %1046, %v472_v38   ;;  %533 = vperm.xlu0 %1045, %v471_v39  }
  0x52   :  { %977 = vmatmul.msk.bf16.gmra.mxu0 %vm209_vm0, %v1018_v40 }
  0x58   :  { %777 = vperm.xlu2 %1047, %v759_v41  }
  0x59   :  { %553 = vperm.xlu1 %1046, %v475_v42   ;;  %548 = vperm.xlu0 %1045, %v474_v43  }
  0x60   :  { %792 = vperm.xlu2 %1047, %v762_v44  }
  0x61   :  { %787 = vperm.xlu1 %1046, %v761_v45   ;;  %782 = vperm.xlu0 %1045, %v760_v46  }
  0x62   :  { %v100_v3 = vpop.permute.xlu2 %99 }
  0x68   :  { %807 = vperm.xlu2 %1047, %v765_v47  }
  0x69   :  { %802 = vperm.xlu1 %1046, %v764_v48   ;;  %797 = vperm.xlu0 %1045, %v763_v49  }
  0x6a   :  { %v105_v8 = vpop.permute.xlu2 %104 }
  0x70   :  { %822 = vperm.xlu2 %1047, %v768_v50  }
  0x71   :  { %817 = vperm.xlu1 %1046, %v767_v51   ;;  %812 = vperm.xlu0 %1045, %v766_v52  }
  0x72   :  { %v120_v18 = vpop.permute.xlu2 %119 }
  0x78   :  { %837 = vperm.xlu2 %1047, %v771_v53  }
  0x79   :  { %832 = vperm.xlu1 %1046, %v770_v54   ;;  %827 = vperm.xlu0 %1045, %v769_v55  }
  0x7a   :  { %v135_v49 = vpop.permute.xlu2 %134 }
  0x7b   :  { %v80_v0 = vpop.permute.xlu0 %79  ;;  %v90_v2 = vpop.permute.xlu1 %89 }
  0x80   :  { %852 = vperm.xlu2 %1047, %v774_v56  }
  0x81   :  { %847 = vperm.xlu1 %1046, %v773_v57   ;;  %842 = vperm.xlu0 %1045, %v772_v58  }
  0x83   :  { %v85_v5 = vpop.permute.xlu0 %84  ;;  %v95_v7 = vpop.permute.xlu1 %94 }
  0x8b   :  { %v110_v10 = vpop.permute.xlu0 %109  ;;  %v115_v17 = vpop.permute.xlu1 %114 }
  0x8f   :  { %v243_v59 = vpop.f32.mrf.mxu0 }
  0x90   :  { %v244_v13 = vadd.f32 %v243_v59, %v80_v0 }
  0x92   :  { %v299_v19 = vmul.f32 0.1, %v244_v13  ;;  %vm283_vm2 = vcmp.gt.f32.partialorder %v244_v13, 0.0 }
  0x93   :  { %v125_v27 = vpop.permute.xlu0 %124  ;;  %v130_v41 = vpop.permute.xlu1 %129 }
  0x94   :  { %v1330_v28 = vsel %vm283_vm2, %v244_v13, %v299_v19 }
  0x95   :  { %v1320_v63 = vpop.f32.mrf.mxu3  ;;  %v352_v36 = vmul.f32 %v1330_v28, %v1330_v28 }
  0x97   :  { %v245_v60 = vpop.f32.mrf.mxu0 }
  0x98   :  { %v246_v12 = vadd.f32 %v245_v60, %v85_v5  ;;  %v269_v60 = vadd.f32 %v1320_v63, %v130_v41 }
  0x9a   :  { %v300_v15 = vmul.f32 0.1, %v246_v12  ;;  %vm284_vm1 = vcmp.gt.f32.partialorder %v246_v12, 0.0  ;;  %v309_v63 = vmul.f32 0.1, %v269_v60  ;;  %vm293_vm10 = vcmp.gt.f32.partialorder %v269_v60, 0.0 }
  0x9b   :  { %v140_v56 = vpop.permute.xlu0 %139 }
  0x9c   :  { %v1328_v24 = vsel %vm284_vm1, %v246_v12, %v300_v15  ;;  %v145_v12 = vpop.permute.xlu1 %144 }
  0x9d   :  { %v1322_v4 = vpop.f32.mrf.mxu3  ;;  %v353_v32 = vmul.f32 %v1328_v24, %v1328_v24  ;;  %v331_v37 = vadd.f32 %v1328_v24, %v1330_v28 }
  0x9f   :  { %v248_v61 = vpop.f32.mrf.mxu0  ;;  %v368_v42 = vadd.f32 %v353_v32, %v352_v36 }
  0xa0   :  { %v249_v14 = vadd.f32 %v248_v61, %v90_v2  ;;  %v271_v2 = vadd.f32 %v1322_v4, %v135_v49 }
  0xa2   :  { %v301_v20 = vmul.f32 0.1, %v249_v14  ;;  %vm285_vm3 = vcmp.gt.f32.partialorder %v249_v14, 0.0  ;;  %v310_v15 = vmul.f32 0.1, %v271_v2  ;;  %vm294_vm12 = vcmp.gt.f32.partialorder %v271_v2, 0.0 }
  0xa4   :  { %v1332_v29 = vsel %vm285_vm3, %v249_v14, %v301_v20  ;;  %v1384_v32 = vsel %vm294_vm12, %v271_v2, %v310_v15 }
  0xa5   :  { %v1324_v9 = vpop.f32.mrf.mxu3  ;;  %v354_v38 = vmul.f32 %v1332_v29, %v1332_v29  ;;  %v332_v43 = vadd.f32 %v331_v37, %v1332_v29 }
  0xa7   :  { %v250_v62 = vpop.f32.mrf.mxu0  ;;  %v369_v50 = vadd.f32 %v368_v42, %v354_v38  ;;  %v363_v42 = vmul.f32 %v1384_v32, %v1384_v32 }
  0xa8   :  { %v251_v16 = vadd.f32 %v250_v62, %v95_v7 }
  0xaa   :  { %v302_v25 = vmul.f32 0.1, %v251_v16  ;;  %vm286_vm4 = vcmp.gt.f32.partialorder %v251_v16, 0.0 }
  0xac   :  { %v1336_v33 = vsel %vm286_vm4, %v251_v16, %v302_v25 }
  0xad   :  { %v1326_v22 = vpop.f32.mrf.mxu3  ;;  %v355_v44 = vmul.f32 %v1336_v33, %v1336_v33  ;;  %v333_v51 = vadd.f32 %v332_v43, %v1336_v33 }
  0xae   :  { %v276_v16 = vadd.f32 %v1326_v22, %v145_v12 }
  0xaf   :  { %v253_v1 = vpop.f32.mrf.mxu0  ;;  %v370_v57 = vadd.f32 %v369_v50, %v355_v44 }
  0xb0   :  { %v254_v21 = vadd.f32 %v253_v1, %v100_v3  ;;  %vm296_vm14 = vcmp.gt.f32.partialorder %v276_v16, 0.0 }
  0xb2   :  { %v303_v30 = vmul.f32 0.1, %v254_v21  ;;  %vm287_vm5 = vcmp.gt.f32.partialorder %v254_v21, 0.0 }
  0xb4   :  { %v1344_v39 = vsel %vm287_vm5, %v254_v21, %v303_v30  ;;  %v1377_v21 = vsel %vm293_vm10, %v269_v60, %v309_v63 }
  0xb5   :  { %v356_v52 = vmul.f32 %v1344_v39, %v1344_v39  ;;  %v278_v53 = vpop.f32.mrf.mxu3  ;;  %v334_v58 = vadd.f32 %v333_v51, %v1344_v39  ;;  %v362_v36 = vmul.f32 %v1377_v21, %v1377_v21 }
  0xb7   :  { %v255_v6 = vpop.f32.mrf.mxu0  ;;  %v371_v62 = vadd.f32 %v370_v57, %v356_v52 }
  0xb8   :  { %v256_v26 = vadd.f32 %v255_v6, %v105_v8 }
  0xba   :  { %v304_v34 = vmul.f32 0.1, %v256_v26  ;;  %vm288_vm6 = vcmp.gt.f32.partialorder %v256_v26, 0.0 }
  0xbc   :  { %v1349_v46 = vsel %vm288_vm6, %v256_v26, %v304_v34  ;;  %v312_v34 = vmul.f32 0.1, %v276_v16 }
  0xbd   :  { %v357_v59 = vmul.f32 %v1349_v46, %v1349_v46  ;;  %v335_v0 = vadd.f32 %v334_v58, %v1349_v46  ;;  %v280_v19 = vpop.f32.mrf.mxu3 }
  0xbf   :  { %v258_v11 = vpop.f32.mrf.mxu0  ;;  %v372_v5 = vadd.f32 %v371_v62, %v357_v59 }
  0xc0   :  { %v259_v31 = vadd.f32 %v258_v11, %v110_v10  ;;  %v274_v10 = vadd.f32 %v1324_v9, %v140_v56 }
  0xc2   :  { %v305_v40 = vmul.f32 0.1, %v259_v31  ;;  %vm289_vm7 = vcmp.gt.f32.partialorder %v259_v31, 0.0  ;;  %vm295_vm13 = vcmp.gt.f32.partialorder %v274_v10, 0.0 }
  0xc4   :  { %v1354_v54 = vsel %vm289_vm7, %v259_v31, %v305_v40 }
  0xc5   :  { %v358_v1 = vmul.f32 %v1354_v54, %v1354_v54  ;;  %v336_v6 = vadd.f32 %v335_v0, %v1354_v54 }
  0xc7   :  { %v260_v23 = vpop.f32.mrf.mxu0  ;;  %v373_v13 = vadd.f32 %v372_v5, %v358_v1 }
  0xc8   :  { %v261_v35 = vadd.f32 %v260_v23, %v115_v17  ;;  %v311_v23 = vmul.f32 0.1, %v274_v10 }
  0xca   :  { %v306_v47 = vmul.f32 0.1, %v261_v35  ;;  %vm290_vm8 = vcmp.gt.f32.partialorder %v261_v35, 0.0  ;;  %v327_v40 = vsel %vm295_vm13, %v274_v10, %v311_v23 }
  0xcc   :  { %v1360_v61 = vsel %vm290_vm8, %v261_v35, %v306_v47 }
  0xcd   :  { %v359_v7 = vmul.f32 %v1360_v61, %v1360_v61  ;;  %v337_v14 = vadd.f32 %v336_v6, %v1360_v61 }
  0xcf   :  { %v263_v45 = vpop.f32.mrf.mxu0  ;;  %v374_v20 = vadd.f32 %v373_v13, %v359_v7 }
  0xd0   :  { %v264_v48 = vadd.f32 %v263_v45, %v120_v18  ;;  %v150_v18 = vpop.permute.xlu2 %149  ;;  %v328_v45 = vsel %vm296_vm14, %v276_v16, %v312_v34 }
  0xd1   :  { %v279_v25 = vadd.f32 %v278_v53, %v150_v18  ;;  %v365_v52 = vmul.f32 %v328_v45, %v328_v45 }
  0xd2   :  { %v307_v55 = vmul.f32 0.1, %v264_v48  ;;  %vm291_vm9 = vcmp.gt.f32.partialorder %v264_v48, 0.0 }
  0xd3   :  { %v313_v41 = vmul.f32 0.1, %v279_v25  ;;  %vm297_vm15 = vcmp.gt.f32.partialorder %v279_v25, 0.0 }
  0xd4   :  { %v1366_v3 = vsel %vm291_vm9, %v264_v48, %v307_v55  ;;  %v364_v48 = vmul.f32 %v327_v40, %v327_v40 }
  0xd5   :  { %v360_v4 = vmul.f32 %v1366_v3, %v1366_v3  ;;  %v338_v9 = vadd.f32 %v337_v14, %v1366_v3  ;;  %v329_v51 = vsel %vm297_vm15, %v279_v25, %v313_v41 }
  0xd6   :  { %v366_v57 = vmul.f32 %v329_v51, %v329_v51 }
  0xd7   :  { %v265_v8 = vpop.f32.mrf.mxu0  ;;  %v375_v30 = vadd.f32 %v374_v20, %v360_v4 }
  0xd8   :  { %v266_v11 = vadd.f32 %v265_v8, %v125_v27  ;;  %v155_v27 = vpop.permute.xlu0 %154 }
  0xd9   :  { %v281_v35 = vadd.f32 %v280_v19, %v155_v27 }
  0xda   :  { %vm292_vm11 = vcmp.gt.f32.partialorder %v266_v11, 0.0  ;;  %v308_v17 = vmul.f32 0.1, %v266_v11 }
  0xdb   :  { %v314_v47 = vmul.f32 0.1, %v281_v35  ;;  %vm298_vm0 = vcmp.gt.f32.partialorder %v281_v35, 0.0 }
  0xdc   :  { %v1379_v26 = vsel %vm292_vm11, %v266_v11, %v308_v17 }
  0xdd   :  { %v339_v31 = vadd.f32 %v338_v9, %v1379_v26  ;;  %v361_v22 = vmul.f32 %v1379_v26, %v1379_v26  ;;  %v330_v56 = vsel %vm298_vm0, %v281_v35, %v314_v47 }
  0xde   :  { %v367_v60 = vmul.f32 %v330_v56, %v330_v56 }
  0xdf   :  { %v340_v37 = vadd.f32 %v339_v31, %v1377_v21  ;;  %v376_v38 = vadd.f32 %v375_v30, %v361_v22 }
  0xe1   :  { %v341_v43 = vadd.f32 %v340_v37, %v1384_v32  ;;  %v377_v44 = vadd.f32 %v376_v38, %v362_v36 }
  0xe3   :  { %v342_v49 = vadd.f32 %v341_v43, %v327_v40  ;;  %v378_v50 = vadd.f32 %v377_v44, %v363_v42 }
  0xe5   :  { %v343_v53 = vadd.f32 %v342_v49, %v328_v45  ;;  %v379_v55 = vadd.f32 %v378_v50, %v364_v48 }
  0xe7   :  { %v344_v58 = vadd.f32 %v343_v53, %v329_v51  ;;  %v380_v59 = vadd.f32 %v379_v55, %v365_v52 }
  0xe9   :  { %v345_v62 = vadd.f32 %v344_v58, %v330_v56  ;;  %v381_v0 = vadd.f32 %v380_v59, %v366_v57 }
  0xeb   :  { %v346_v1 = vrot.slane %v345_v62, 4  ;;  %v382_v2 = vadd.f32 %v381_v0, %v367_v60 }
  0xed   :  { %v347_v5 = vadd.f32 %v346_v1, %v345_v62  ;;  %v383_v6 = vrot.slane %v382_v2, 4 }
  0xef   :  { %v348_v7 = vrot.slane %v347_v5, 2  ;;  %v384_v8 = vadd.f32 %v383_v6, %v382_v2 }
  0xf1   :  { %v349_v63 = vadd.f32 %v348_v7, %v347_v5  ;;  %v385_v10 = vrot.slane %v384_v8, 2  ;;  %v1028_v7 = vld [vmem:[%s1490_s3 + $0x20] sm:$0xff] }
  0xf3   :  { %v350_v11 = vrot.slane %v349_v63, 1  ;;  %v386_v12 = vadd.f32 %v385_v10, %v384_v8  ;;  %v1026_v8 = vld [vmem:[%s1490_s3 + $0x10] sm:$0xff]  ;;  %v1027_v10 = vld [vmem:[%s1490_s3 + $0x18] sm:$0xff] }
  0xf5   :  { %v351_v13 = vadd.f32 %v350_v11, %v349_v63  ;;  %v387_v14 = vrot.slane %v386_v12, 1  ;;  %v1030_v63 = vld [vmem:[%s1490_s3 + $0x30] sm:$0xff]  ;;  %v1031_v11 = vld [vmem:[%s1490_s3 + $0x38] sm:$0xff] }
  0xf7   :  { %v388_v4 = vadd.f32 %v387_v14, %v386_v12  ;;  %v1392_v15 = vmul.f32 0.0078125, %v351_v13  ;;  %v479_v12 = vpop.permute.xlu1 %478  ;;  %v484_v13 = vpop.permute.xlu2 %483 }
  0xf8   :  { %v489_v14 = vpop.permute.xlu0 %488 }
  0xf9   :  { %v390_v16 = vmul.f32 0.0078125, %v388_v4  ;;  %v391_v17 = vmul.f32 %v1392_v15, %v1392_v15  ;;  %v418_v31 = vsub.f32 %v329_v51, %v1392_v15  ;;  %v419_v22 = vsub.f32 %v330_v56, %v1392_v15 }
  0xfa   :  { %v416_v35 = vsub.f32 %v327_v40, %v1392_v15  ;;  %v417_v36 = vsub.f32 %v328_v45, %v1392_v15  ;;  %v410_v41 = vsub.f32 %v1354_v54, %v1392_v15  ;;  %v411_v42 = vsub.f32 %v1360_v61, %v1392_v15 }
  0xfb   :  { %v392_v18 = vsub.f32 %v390_v16, %v391_v17  ;;  %v414_v40 = vsub.f32 %v1377_v21, %v1392_v15  ;;  %v415_v45 = vsub.f32 %v1384_v32, %v1392_v15  ;;  %v412_v61 = vsub.f32 %v1366_v3, %v1392_v15 }
  0xfc   :  { %v413_v53 = vsub.f32 %v1379_v26, %v1392_v15  ;;  %v408_v32 = vsub.f32 %v1344_v39, %v1392_v15  ;;  %v409_v58 = vsub.f32 %v1349_v46, %v1392_v15  ;;  %v406_v3 = vsub.f32 %v1332_v29, %v1392_v15 }
  0xfd   :  { %v393_v19 = vadd.f32 1e-05, %v392_v18  ;;  %v407_v26 = vsub.f32 %v1336_v33, %v1392_v15  ;;  %v404_v39 = vsub.f32 %v1330_v28, %v1392_v15  ;;  %v405_v46 = vsub.f32 %v1328_v24, %v1392_v15  ;;  %v1024_v33 = vld [vmem:[%s1490_s3] sm:$0xff]  ;;  %v1025_v24 = vld [vmem:[%s1490_s3 + $0x8] sm:$0xff] }
  0xfe   :  { %v1029_v28 = vld [vmem:[%s1490_s3 + $0x28] sm:$0xff]  ;;  %s907_s3 = sld [smem:[#allocation2]] }
  0xff   :  { %1048 = vrsqrt.f32 %v393_v19  ;;  %vm400_vm2 = vweird.f32 %v393_v19  ;;  %v494_v4 = vpop.permute.xlu1 %493  ;;  %v499_v15 = vpop.permute.xlu2 %498 }
 0x100   :  { %v504_v16 = vpop.permute.xlu0 %503 }
 0x105   :  { %v1049_v20 = vpop.eup %1048 }
 0x106   :  { %v395_v9 = vmul.f32 %v1049_v20, %v393_v19  ;;  %vm401_vm1 = vweird.f32 %v1049_v20 }
 0x107   :  { %vm402_vm3 = vmor %vm400_vm2, %vm401_vm1  ;;  %v509_v17 = vpop.permute.xlu1 %508  ;;  %v1448_v19 = vpop.permute.xlu2 %513 }
 0x108   :  { %v396_v23 = vmul.f32 %v1049_v20, %v395_v9 }
 0x10a   :  { %v397_v25 = vmul.f32 0.5, %v396_v23 }
 0x10c   :  { %v398_v27 = vsub.f32 1.5, %v397_v25 }
 0x10e   :  { %v399_v30 = vmul.f32 %v1049_v20, %v398_v27 }
 0x10f   :  { %v524_v25 = vpop.permute.xlu1 %523  ;;  %v1450_v27 = vpop.permute.xlu2 %528 }
 0x110   :  { %v403_v34 = vsel %vm402_vm3, %v1049_v20, %v399_v30  ;;  %v519_v20 = vpop.permute.xlu0 %518 }
 0x111   :  { %v434_v37 = vmul.f32 %v418_v31, %v403_v34  ;;  %v435_v38 = vmul.f32 %v419_v22, %v403_v34  ;;  %v432_v43 = vmul.f32 %v416_v35, %v403_v34  ;;  %v433_v47 = vmul.f32 %v417_v36, %v403_v34 }
 0x112   :  { %v426_v48 = vmul.f32 %v410_v41, %v403_v34  ;;  %v427_v49 = vmul.f32 %v411_v42, %v403_v34  ;;  %v430_v52 = vmul.f32 %v414_v40, %v403_v34  ;;  %v431_v54 = vmul.f32 %v415_v45, %v403_v34 }
 0x113   :  { %v443_v44 = vpack.c.bf16 %v435_v38, %v434_v37  ;;  %v442_v51 = vpack.c.bf16 %v433_v47, %v432_v43  ;;  %v428_v56 = vmul.f32 %v412_v61, %v403_v34  ;;  %v429_v57 = vmul.f32 %v413_v53, %v403_v34 }
 0x114   :  { %v439_v50 = vpack.c.bf16 %v427_v49, %v426_v48  ;;  %v441_v55 = vpack.c.bf16 %v431_v54, %v430_v52  ;;  %v424_v59 = vmul.f32 %v408_v32, %v403_v34  ;;  %v425_v60 = vmul.f32 %v409_v58, %v403_v34 }
 0x115   :  { %604 = vmatpush.bf16.msra.mxu1 %v443_v44  ;;  %1034 = vmatpush.bf16.msra.mxu2 %v443_v44  ;;  %v440_v21 = vpack.c.bf16 %v429_v57, %v428_v56  ;;  %v422_v0 = vmul.f32 %v406_v3, %v403_v34  ;;  %v423_v1 = vmul.f32 %v407_v26, %v403_v34 }
 0x116   :  { %v438_v62 = vpack.c.bf16 %v425_v60, %v424_v59  ;;  %v420_v5 = vmul.f32 %v404_v39, %v403_v34  ;;  %v421_v6 = vmul.f32 %v405_v46, %v403_v34 }
 0x117   :  { %v437_v2 = vpack.c.bf16 %v423_v1, %v422_v0  ;;  %v1454_v34 = vpop.permute.xlu1 %538  ;;  %v1458_v36 = vpop.permute.xlu2 %543 }
 0x118   :  { %v436_v29 = vpack.c.bf16 %v421_v6, %v420_v5  ;;  %v1452_v31 = vpop.permute.xlu0 %533 }
 0x119   :  { %605 = vmatpush.bf16.msra.mxu1 %v442_v51  ;;  %1035 = vmatpush.bf16.msra.mxu2 %v442_v51 }
 0x11d   :  { %606 = vmatpush.bf16.msra.mxu1 %v441_v55  ;;  %1036 = vmatpush.bf16.msra.mxu2 %v441_v55 }
 0x11f   :  { %v1462_v41 = vpop.permute.xlu1 %553  ;;  %v778_v44 = vpop.permute.xlu2 %777 }
 0x120   :  { %v1460_v38 = vpop.permute.xlu0 %548 }
 0x121   :  { %607 = vmatpush.bf16.msra.mxu1 %v440_v21  ;;  %1037 = vmatpush.bf16.msra.mxu2 %v440_v21 }
 0x125   :  { %608 = vmatpush.bf16.msra.mxu1 %v439_v50  ;;  %1038 = vmatpush.bf16.msra.mxu2 %v439_v50 }
 0x127   :  { %v788_v50 = vpop.permute.xlu1 %787  ;;  %v793_v56 = vpop.permute.xlu2 %792 }
 0x128   :  { %v783_v47 = vpop.permute.xlu0 %782 }
 0x129   :  { %609 = vmatpush.bf16.msra.mxu1 %v438_v62  ;;  %1039 = vmatpush.bf16.msra.mxu2 %v438_v62 }
 0x12d   :  { %610 = vmatpush.bf16.msra.mxu1 %v437_v2  ;;  %1040 = vmatpush.bf16.msra.mxu2 %v437_v2 }
 0x130   :  { %v798_v59 = vpop.permute.xlu0 %797 }
 0x131   :  { %611 = vmatpush.bf16.msra.mxu1 %v436_v29  ;;  %1041 = vmatpush.bf16.msra.mxu2 %v436_v29 }
 0x134   :  { %612 = vmatmul.bf16.vlgmr.msra.gmra.mxu1 %v1024_v33  ;;  %632 = vmatmul.bf16.vlgmr.msra.gmra.mxu2 %v1028_v7 }
 0x144   :  { %617 = vmatmul.bf16.gmra.mxu1 %v1025_v24  ;;  %637 = vmatmul.bf16.gmra.mxu2 %v1029_v28  ;;  %v803_v24 = vpop.permute.xlu1 %802 }
 0x154   :  { %622 = vmatmul.bf16.gmra.mxu1 %v1026_v8  ;;  %642 = vmatmul.bf16.gmra.mxu2 %v1030_v63 }
 0x164   :  { %627 = vmatmul.bf16.gmra.mxu1 %v1027_v10  ;;  %647 = vmatmul.bf16.gmra.mxu2 %v1031_v11 }
 0x1b1   :  { %v613_v18 = vpop.f32.mrf.mxu1 }
 0x1b2   :  { %v614_v48 = vadd.f32 %v613_v18, %v479_v12 }
 0x1b4   :  { %v669_v51 = vmul.f32 0.1, %v614_v48  ;;  %vm653_vm4 = vcmp.gt.f32.partialorder %v614_v48, 0.0 }
 0x1b6   :  { %v685_v57 = vsel %vm653_vm4, %v614_v48, %v669_v51  ;;  %v813_v48 = vpop.permute.xlu0 %812 }
 0x1b7   :  { %v633_v9 = vpop.f32.mrf.mxu2  ;;  %v722_v0 = vmul.f32 %v685_v57, %v685_v57  ;;  %v855_v39 = vmul.f32 %v778_v44, %v685_v57 }
 0x1b8   :  { %v634_v60 = vadd.f32 %v633_v9, %v519_v20 }
 0x1b9   :  { %v615_v23 = vpop.f32.mrf.mxu1 }
 0x1ba   :  { %v616_v49 = vadd.f32 %v615_v23, %v484_v13  ;;  %vm661_vm10 = vcmp.gt.f32.partialorder %v634_v60, 0.0  ;;  %v808_v23 = vpop.permute.xlu2 %807 }
 0x1bc   :  { %v670_v52 = vmul.f32 0.1, %v616_v49  ;;  %vm654_vm5 = vcmp.gt.f32.partialorder %v616_v49, 0.0 }
 0x1be   :  { %v686_v21 = vsel %vm654_vm5, %v616_v49, %v670_v52 }
 0x1bf   :  { %v635_v30 = vpop.f32.mrf.mxu2  ;;  %v723_v1 = vmul.f32 %v686_v21, %v686_v21  ;;  %v856_v46 = vmul.f32 %v783_v47, %v686_v21  ;;  %v701_v28 = vadd.f32 %v686_v21, %v685_v57 }
 0x1c0   :  { %v636_v29 = vadd.f32 %v635_v30, %v524_v25 }
 0x1c1   :  { %v618_v22 = vpop.f32.mrf.mxu1  ;;  %v738_v10 = vadd.f32 %v723_v1, %v722_v0  ;;  %v871_v13 = vadd.f32 %v856_v46, %v855_v39 }
 0x1c2   :  { %v619_v40 = vadd.f32 %v618_v22, %v489_v14  ;;  %v678_v18 = vmul.f32 0.1, %v636_v29  ;;  %vm662_vm12 = vcmp.gt.f32.partialorder %v636_v29, 0.0 }
 0x1c4   :  { %v671_v53 = vmul.f32 0.1, %v619_v40  ;;  %vm655_vm6 = vcmp.gt.f32.partialorder %v619_v40, 0.0 }
 0x1c6   :  { %v687_v3 = vsel %vm655_vm6, %v619_v40, %v671_v53 }
 0x1c7   :  { %v1456_v35 = vpop.f32.mrf.mxu2  ;;  %v724_v33 = vmul.f32 %v687_v3, %v687_v3  ;;  %v857_v8 = vmul.f32 %v788_v50, %v687_v3  ;;  %v702_v14 = vadd.f32 %v701_v28, %v687_v3 }
 0x1c9   :  { %v620_v37 = vpop.f32.mrf.mxu1  ;;  %v739_v20 = vadd.f32 %v738_v10, %v724_v33  ;;  %v872_v25 = vadd.f32 %v871_v13, %v857_v8  ;;  %v823_v33 = vpop.permute.xlu2 %822 }
 0x1ca   :  { %v621_v54 = vadd.f32 %v620_v37, %v494_v4 }
 0x1cc   :  { %v672_v32 = vmul.f32 0.1, %v621_v54  ;;  %vm656_vm7 = vcmp.gt.f32.partialorder %v621_v54, 0.0 }
 0x1ce   :  { %v688_v2 = vsel %vm656_vm7, %v621_v54, %v672_v32 }
 0x1cf   :  { %v1464_v42 = vpop.f32.mrf.mxu2  ;;  %v725_v11 = vmul.f32 %v688_v2, %v688_v2  ;;  %v858_v4 = vmul.f32 %v793_v56, %v688_v2  ;;  %v694_v56 = vsel %vm662_vm12, %v636_v29, %v678_v18 }
 0x1d0   :  { %v641_v40 = vadd.f32 %v1464_v42, %v1452_v31 }
 0x1d1   :  { %v623_v43 = vpop.f32.mrf.mxu1  ;;  %v740_v44 = vadd.f32 %v739_v20, %v725_v11  ;;  %v873_v49 = vadd.f32 %v872_v25, %v858_v4 }
 0x1d2   :  { %v624_v55 = vadd.f32 %v623_v43, %v499_v15  ;;  %v639_v43 = vadd.f32 %v1456_v35, %v1450_v27  ;;  %vm664_vm15 = vcmp.gt.f32.partialorder %v641_v40, 0.0  ;;  %v680_v3 = vmul.f32 0.1, %v641_v40 }
 0x1d4   :  { %v673_v26 = vmul.f32 0.1, %v624_v55  ;;  %vm657_vm8 = vcmp.gt.f32.partialorder %v624_v55, 0.0  ;;  %vm663_vm13 = vcmp.gt.f32.partialorder %v639_v43, 0.0 }
 0x1d6   :  { %v689_v63 = vsel %vm657_vm8, %v624_v55, %v673_v26 }
 0x1d7   :  { %v1466_v45 = vpop.f32.mrf.mxu2  ;;  %v726_v9 = vmul.f32 %v689_v63, %v689_v63  ;;  %v859_v30 = vmul.f32 %v798_v59, %v689_v63  ;;  %v679_v59 = vmul.f32 0.1, %v639_v43 }
 0x1d9   :  { %v625_v61 = vpop.f32.mrf.mxu1  ;;  %v874_v57 = vadd.f32 %v873_v49, %v859_v30 }
 0x1da   :  { %v626_v58 = vadd.f32 %v625_v61, %v504_v16  ;;  %v677_v16 = vmul.f32 0.1, %v634_v60  ;;  %v741_v61 = vadd.f32 %v740_v44, %v726_v9 }
 0x1dc   :  { %v674_v5 = vmul.f32 0.1, %v626_v58  ;;  %vm658_vm9 = vcmp.gt.f32.partialorder %v626_v58, 0.0  ;;  %v693_v54 = vsel %vm661_vm10, %v634_v60, %v677_v16  ;;  %v644_v60 = vadd.f32 %v1466_v45, %v1454_v34 }
 0x1dd   :  { %v864_v34 = vmul.f32 %v823_v33, %v694_v56  ;;  %v696_v45 = vsel %vm664_vm15, %v641_v40, %v680_v3 }
 0x1de   :  { %v690_v15 = vsel %vm658_vm9, %v626_v58, %v674_v5  ;;  %v818_v58 = vpop.permute.xlu1 %817  ;;  %v681_v10 = vmul.f32 0.1, %v644_v60  ;;  %vm665_vm0 = vcmp.gt.f32.partialorder %v644_v60, 0.0 }
 0x1df   :  { %v1468_v62 = vpop.f32.mrf.mxu2  ;;  %v727_v47 = vmul.f32 %v690_v15, %v690_v15  ;;  %v860_v51 = vmul.f32 %v803_v24, %v690_v15  ;;  %v863_v5 = vmul.f32 %v818_v58, %v693_v54 }
 0x1e0   :  { %v646_v29 = vadd.f32 %v1468_v62, %v1458_v36  ;;  %v697_v25 = vsel %vm665_vm0, %v644_v60, %v681_v10 }
 0x1e1   :  { %v628_v6 = vpop.f32.mrf.mxu1  ;;  %v742_v35 = vadd.f32 %v741_v61, %v727_v47  ;;  %v875_v31 = vadd.f32 %v874_v57, %v860_v51  ;;  %v838_v61 = vpop.permute.xlu2 %837 }
 0x1e2   :  { %v629_v7 = vadd.f32 %v628_v6, %v509_v17  ;;  %v703_v17 = vadd.f32 %v702_v14, %v688_v2  ;;  %v730_v2 = vmul.f32 %v693_v54, %v693_v54  ;;  %v731_v6 = vmul.f32 %v694_v56, %v694_v56 }
 0x1e3   :  { %v682_v62 = vmul.f32 0.1, %v646_v29  ;;  %vm666_vm1 = vcmp.gt.f32.partialorder %v646_v29, 0.0 }
 0x1e4   :  { %vm659_vm11 = vcmp.gt.f32.partialorder %v629_v7, 0.0  ;;  %v675_v12 = vmul.f32 0.1, %v629_v7  ;;  %v704_v50 = vadd.f32 %v703_v17, %v689_v63 }
 0x1e5   :  { %v698_v44 = vsel %vm666_vm1, %v646_v29, %v682_v62 }
 0x1e6   :  { %v691_v22 = vsel %vm659_vm11, %v629_v7, %v675_v12  ;;  %v705_v21 = vadd.f32 %v704_v50, %v690_v15  ;;  %v695_v7 = vsel %vm663_vm13, %v639_v43, %v679_v59  ;;  %v828_v12 = vpop.permute.xlu0 %827  ;;  %v833_v30 = vpop.permute.xlu1 %832  ;;  %v735_v50 = vmul.f32 %v698_v44, %v698_v44 }
 0x1e7   :  { %v648_v37 = vpop.f32.mrf.mxu2  ;;  %v728_v53 = vmul.f32 %v691_v22, %v691_v22  ;;  %v861_v27 = vmul.f32 %v808_v23, %v691_v22  ;;  %v732_v15 = vmul.f32 %v695_v7, %v695_v7  ;;  %v865_v36 = vmul.f32 %v828_v12, %v695_v7 }
 0x1e8   :  { %v706_v42 = vadd.f32 %v705_v21, %v691_v22  ;;  %v649_v11 = vadd.f32 %v648_v37, %v1460_v38  ;;  %v733_v23 = vmul.f32 %v696_v45, %v696_v45  ;;  %v866_v43 = vmul.f32 %v833_v30, %v696_v45 }
 0x1e9   :  { %v630_v52 = vpop.f32.mrf.mxu1  ;;  %v743_v26 = vadd.f32 %v742_v35, %v728_v53  ;;  %v853_v29 = vpop.permute.xlu2 %852 }
 0x1ea   :  { %v631_v55 = vadd.f32 %v630_v52, %v1448_v19  ;;  %v876_v19 = vadd.f32 %v875_v31, %v861_v27  ;;  %v683_v17 = vmul.f32 0.1, %v649_v11  ;;  %vm667_vm2 = vcmp.gt.f32.partialorder %v649_v11, 0.0 }
 0x1ec   :  { %vm660_vm14 = vcmp.gt.f32.partialorder %v631_v55, 0.0  ;;  %v676_v32 = vmul.f32 0.1, %v631_v55 }
 0x1ee   :  { %v692_v0 = vsel %vm660_vm14, %v631_v55, %v676_v32  ;;  %v867_v55 = vmul.f32 %v838_v61, %v697_v25  ;;  %v843_v59 = vpop.permute.xlu0 %842 }
 0x1ef   :  { %v707_v1 = vadd.f32 %v706_v42, %v692_v0  ;;  %v729_v39 = vmul.f32 %v692_v0, %v692_v0  ;;  %v862_v46 = vmul.f32 %v813_v48, %v692_v0  ;;  %v650_v63 = vpop.f32.mrf.mxu2  ;;  %v734_v48 = vmul.f32 %v697_v25, %v697_v25 }
 0x1f0   :  { %v651_v16 = vadd.f32 %v650_v63, %v1462_v41  ;;  %v699_v41 = vsel %vm667_vm2, %v649_v11, %v683_v17  ;;  %v868_v31 = vmul.f32 %v843_v59, %v698_v44 }
 0x1f1   :  { %v708_v24 = vadd.f32 %v707_v1, %v693_v54  ;;  %v744_v28 = vadd.f32 %v743_v26, %v729_v39  ;;  %v877_v8 = vadd.f32 %v876_v19, %v862_v46  ;;  %v848_v19 = vpop.permute.xlu1 %847 }
 0x1f2   :  { %v684_v47 = vmul.f32 0.1, %v651_v16  ;;  %vm668_vm3 = vcmp.gt.f32.partialorder %v651_v16, 0.0  ;;  %v869_v1 = vmul.f32 %v848_v19, %v699_v41 }
 0x1f3   :  { %v709_v13 = vadd.f32 %v708_v24, %v694_v56  ;;  %v745_v14 = vadd.f32 %v744_v28, %v730_v2  ;;  %v878_v4 = vadd.f32 %v877_v8, %v863_v5  ;;  %v736_v56 = vmul.f32 %v699_v41, %v699_v41 }
 0x1f4   :  { %v700_v53 = vsel %vm668_vm3, %v651_v16, %v684_v47 }
 0x1f5   :  { %v710_v18 = vadd.f32 %v709_v13, %v695_v7  ;;  %v746_v20 = vadd.f32 %v745_v14, %v731_v6  ;;  %v879_v9 = vadd.f32 %v878_v4, %v864_v34  ;;  %v737_v35 = vmul.f32 %v700_v53, %v700_v53 }
 0x1f6   :  { %v870_v7 = vmul.f32 %v853_v29, %v700_v53 }
 0x1f7   :  { %v747_v38 = vadd.f32 %v746_v20, %v732_v15  ;;  %v880_v22 = vadd.f32 %v879_v9, %v865_v36  ;;  %v711_v37 = vadd.f32 %v710_v18, %v696_v45  ;;  %v909_v20 = vstv %s907_s3 }
 0x1f9   :  { %v712_v49 = vadd.f32 %v711_v37, %v697_v25  ;;  %v748_v40 = vadd.f32 %v747_v38, %v733_v23  ;;  %v881_v54 = vadd.f32 %v880_v22, %v866_v43  ;;  %v913_v43 = vstv %s1013_s27 }
 0x1fb   :  { %v713_v51 = vadd.f32 %v712_v49, %v698_v44  ;;  %v749_v52 = vadd.f32 %v748_v40, %v734_v48  ;;  %v882_v58 = vadd.f32 %v881_v54, %v867_v55 }
 0x1fd   :  { %v714_v57 = vadd.f32 %v713_v51, %v699_v41  ;;  %v750_v21 = vadd.f32 %v749_v52, %v735_v50  ;;  %v883_v0 = vadd.f32 %v882_v58, %v868_v31 }
 0x1ff   :  { %v715_v27 = vadd.f32 %v714_v57, %v700_v53  ;;  %v751_v32 = vadd.f32 %v750_v21, %v736_v56  ;;  %v884_v6 = vadd.f32 %v883_v0, %v869_v1 }
 0x201   :  { %v716_v42 = vrot.slane %v715_v27, 4  ;;  %v752_v3 = vadd.f32 %v751_v32, %v737_v35  ;;  %v885_v8 = vadd.f32 %v884_v6, %v870_v7 }
 0x203   :  { %v717_v60 = vadd.f32 %v716_v42, %v715_v27  ;;  %v753_v26 = vrot.slane %v752_v3, 4  ;;  %v886_v10 = vrot.slane %v885_v8, 4 }
 0x205   :  { %v718_v39 = vrot.slane %v717_v60, 2  ;;  %v754_v46 = vadd.f32 %v753_v26, %v752_v3  ;;  %v887_v14 = vadd.f32 %v886_v10, %v885_v8 }
 0x207   :  { %v719_v2 = vadd.f32 %v718_v39, %v717_v60  ;;  %v755_v5 = vrot.slane %v754_v46, 2  ;;  %v888_v15 = vrot.slane %v887_v14, 2 }
 0x209   :  { %v756_v33 = vadd.f32 %v755_v5, %v754_v46  ;;  %v720_v24 = vrot.slane %v719_v2, 1  ;;  %v889_v62 = vadd.f32 %v888_v15, %v887_v14 }
 0x20b   :  { %v757_v28 = vrot.slane %v756_v33, 1  ;;  %v721_v63 = vadd.f32 %v720_v24, %v719_v2  ;;  %v890_v9 = vrot.slane %v889_v62, 1 }
 0x20d   :  { %v758_v34 = vadd.f32 %v757_v28, %v756_v33  ;;  %v892_v45 = vmul.f32 0.0078125, %v721_v63  ;;  %v891_v30 = vadd.f32 %v890_v9, %v889_v62 }
 0x20f   :  { %v893_v11 = vmul.f32 0.0078125, %v758_v34  ;;  %v894_v12 = vmul.f32 %v892_v45, %v892_v45  ;;  %v910_v25 = vmul.f32 %v909_v20, %v892_v45 }
 0x211   :  { %v895_v13 = vsub.f32 %v893_v11, %v894_v12  ;;  %v911_v22 = vsub.f32 %v891_v30, %v910_v25 }
 0x213   :  { %v896_v4 = vadd.f32 1e-05, %v895_v13 }
 0x215   :  { %1050 = vrsqrt.f32 %v896_v4  ;;  %vm903_vm5 = vweird.f32 %v896_v4 }
 0x21b   :  { %v1051_v36 = vpop.eup %1050 }
 0x21c   :  { %v898_v16 = vmul.f32 %v1051_v36, %v896_v4  ;;  %vm904_vm4 = vweird.f32 %v1051_v36 }
 0x21d   :  { %vm905_vm6 = vmor %vm903_vm5, %vm904_vm4 }
 0x21e   :  { %v899_v18 = vmul.f32 %v1051_v36, %v898_v16 }
 0x220   :  { %v900_v23 = vmul.f32 0.5, %v899_v18 }
 0x222   :  { %v901_v17 = vsub.f32 1.5, %v900_v23 }
 0x224   :  { %v902_v38 = vmul.f32 %v1051_v36, %v901_v17 }
 0x226   :  { %v906_v37 = vsel %vm905_vm6, %v1051_v36, %v902_v38 }
 0x227   :  { %v912_v44 = vmul.f32 %v911_v22, %v906_v37 }
 0x229   :  { %v914_v47 = vadd.f32 %v913_v43, %v912_v44 }
 0x22b   :  { %915 = vst [vmem:[#allocation5] sm:$0x1] %v914_v47 }
 0x22c   :  { %926 = dma.vmem_to_hbm [thread:$0]  %s922_s29, 16, %s924_s2, [#allocation3]  }
 0x22d   :  { %1090 = dma.done.wait [#allocation3], 16  }
 0x22e   :  { %1091 = vsyncadd [#allocation3], 4294967280 }
 0x22f   :  { %931 = vsyncpa [#allocation3], 1 }
 0x230   :  { %932 = vsyncpa [#allocation4], 1 }

</bundles_post_ra>
